<compile_context>
chip_gen: v7x
topology: tpu7x:2x2x1
jax: 0.10.0
libtpu: 0.0.40
codegen_flags: <defaults>
</compile_context>

<pallas_src>
import functools

import jax
import jax.numpy as jnp
from jax.experimental import pallas as pl
from jax.experimental.pallas import tpu as pltpu

PART = 6  # self.part = 6


def _round_up(v, m):
    return (v + m - 1) // m * m


def _pick_batch_tile(n_pad, max_tile=128):
    # Largest batch tile <= max_tile that divides n_pad (n_pad is a multiple of 8).
    t = min(n_pad, max_tile)
    while n_pad % t:
        t -= 8
    return max(t, 8)


def _backbone_pool(x_ref, bw_ref, bb_ref, *, s):
    """Backbone 1x1 conv + ReLU + per-stripe average pool for one tile.

    x_ref:  (N_tile, S, C_in)   bf16 stripe block (part dim squeezed away)
    bw_ref: (C_in, C_pad)       bf16 backbone weight
    bb_ref: (1, C_pad)          f32 backbone bias
    returns (N_tile, C_pad) f32 pooled features.
    """
    n_tile, _, c_in = x_ref.shape
    x2 = x_ref[...].reshape(n_tile * s, c_in)               # merge (N_tile, S) rows
    y = jnp.dot(x2, bw_ref[...], preferred_element_type=jnp.float32)
    y = jnp.maximum(y + bb_ref[...], 0.0)                   # (N_tile*S, C_pad) f32
    c_pad = y.shape[-1]
    # AdaptiveAvgPool2d over the stripe: sublane reduce, no extra MXU work.
    pooled = y.reshape(n_tile, s, c_pad).sum(axis=1) * (1.0 / s)
    return pooled                                            # (N_tile, C_pad) f32


def _pcb_pool_kernel(x_ref, bw_ref, bb_ref, out_ref, *, s):
    # featrue_H=False path: only the pooled backbone feature is written back.
    out_ref[...] = _backbone_pool(x_ref, bw_ref, bb_ref, s=s)


def _pcb_cls_kernel(x_ref, bw_ref, bb_ref, cw_ref, cs_ref, csh_ref, out_ref, *, s):
    # featrue_H=True path: pooled feature -> per-part classifier add_block
    # (1x1 conv, bias=False, folded eval BatchNorm). No pooled HBM writeback.
    pooled = _backbone_pool(x_ref, bw_ref, bb_ref, s=s)
    z = jnp.dot(pooled.astype(jnp.bfloat16), cw_ref[...],
                preferred_element_type=jnp.float32)          # (N_tile, B_pad)
    out_ref[...] = z * cs_ref[...] + csh_ref[...]            # f32 epilogue


def pcb_test_forward(x_nchw, params, featrue_H=False):
    n, c_in, h, w = x_nchw.shape
    assert h % PART == 0, "feature-map height must split into 6 parts"
    h_per = h // PART
    s = h_per * w
    c_feat = params["backbone_w"].shape[1]
    b_dim = params["cls_w"].shape[2]
    c_pad = _round_up(c_feat, 128)
    b_pad = _round_up(b_dim, 128)
    n_pad = _round_up(n, 8)          # sublane-dense output rows
    n_tile = _pick_batch_tile(n_pad)
    n_bt = n_pad // n_tile
    grid = (PART, n_bt)

    # NCHW -> NHWC (the one unavoidable relayout) -> (N_pad, PART, S, C_in).
    # Stripes are sliced straight out of this by the BlockSpec index_map; no
    # part-major permutation is materialized in HBM. Cast to bf16 halves the
    # HBM traffic of the dominant operand.
    x = jnp.transpose(x_nchw, (0, 2, 3, 1)).astype(jnp.bfloat16)
    x = x.reshape(n, PART, s, c_in)
    if n_pad != n:
        x = jnp.pad(x, ((0, n_pad - n), (0, 0), (0, 0), (0, 0)))

    # Lane-pad channel dims to multiples of 128 so every store is a full vst.
    bw = jnp.pad(params["backbone_w"],
                 ((0, 0), (0, c_pad - c_feat))).astype(jnp.bfloat16)
    bb = jnp.pad(params["backbone_b"], ((0, 0), (0, c_pad - c_feat)))  # f32

    x_spec = pl.BlockSpec((n_tile, None, s, c_in), lambda p, b: (b, p, 0, 0))
    bw_spec = pl.BlockSpec((c_in, c_pad), lambda p, b: (0, 0))
    bb_spec = pl.BlockSpec((1, c_pad), lambda p, b: (0, 0))

    m_total = PART * n_pad * s
    flops = 2 * m_total * c_in * c_pad + m_total * c_pad
    bytes_accessed = x.size * 2 + bw.size * 2 + bb.size * 4
    blk_bytes = (n_tile * s * c_in * 2 + c_in * c_pad * 2 + c_pad * 4)
    interm_bytes = n_tile * s * c_pad * 4

    if featrue_H:
        cw = jnp.pad(params["cls_w"],
                     ((0, 0), (0, c_pad - c_feat), (0, b_pad - b_dim))
                     ).astype(jnp.bfloat16)
        cs = jnp.pad(params["cls_scale"], ((0, 0), (0, 0), (0, b_pad - b_dim)),
                     constant_values=1.0)
        csh = jnp.pad(params["cls_shift"], ((0, 0), (0, 0), (0, b_pad - b_dim)))

        flops += 2 * PART * n_pad * c_pad * b_pad + 2 * PART * n_pad * b_pad
        bytes_accessed += (cw.size * 2 + cs.size * 4 + csh.size * 4
                           + PART * n_pad * b_pad * 4)
        blk_bytes += (c_pad * b_pad * 2 + 2 * b_pad * 4 + n_tile * b_pad * 4)
        vmem_limit = int(min(max(2 * blk_bytes + interm_bytes + (4 << 20),
                                 16 << 20), 100 << 20))

        feats = pl.pallas_call(
            functools.partial(_pcb_cls_kernel, s=s),
            out_shape=jax.ShapeDtypeStruct((PART * n_pad, b_pad), jnp.float32),
            grid=grid,
            in_specs=[
                x_spec, bw_spec, bb_spec,
                pl.BlockSpec((None, c_pad, b_pad), lambda p, b: (p, 0, 0)),
                pl.BlockSpec((None, 1, b_pad), lambda p, b: (p, 0, 0)),
                pl.BlockSpec((None, 1, b_pad), lambda p, b: (p, 0, 0)),
            ],
            out_specs=pl.BlockSpec((n_tile, b_pad),
                                   lambda p, b: (p * n_bt + b, 0)),
            compiler_params=pltpu.CompilerParams(
                dimension_semantics=("parallel", "parallel"),
                vmem_limit_bytes=vmem_limit),
            cost_estimate=pl.CostEstimate(flops=int(flops), transcendentals=0,
                                          bytes_accessed=int(bytes_accessed)),
        )(x, bw, bb, cw, cs, csh)
        out = feats.reshape(PART, n_pad, b_pad)[:, :n, :b_dim]
        # torch.cat(y, 2) -> (N, B, 6, 1); f = x.view(N, B, 6)
        return jnp.transpose(out, (1, 2, 0))

    bytes_accessed += PART * n_pad * c_pad * 4
    blk_bytes += n_tile * c_pad * 4
    vmem_limit = int(min(max(2 * blk_bytes + interm_bytes + (4 << 20),
                             16 << 20), 100 << 20))

    pooled = pl.pallas_call(
        functools.partial(_pcb_pool_kernel, s=s),
        out_shape=jax.ShapeDtypeStruct((PART * n_pad, c_pad), jnp.float32),
        grid=grid,
        in_specs=[x_spec, bw_spec, bb_spec],
        out_specs=pl.BlockSpec((n_tile, c_pad),
                               lambda p, b: (p * n_bt + b, 0)),
        compiler_params=pltpu.CompilerParams(
            dimension_semantics=("parallel", "parallel"),
            vmem_limit_bytes=vmem_limit),
        cost_estimate=pl.CostEstimate(flops=int(flops), transcendentals=0,
                                      bytes_accessed=int(bytes_accessed)),
    )(x, bw, bb)
    out = pooled.reshape(PART, n_pad, c_pad)[:, :n, :c_feat]
    # avgpool output (N, C, 6, 1) -> f = x.view(N, C, 6)
    return jnp.transpose(out, (1, 2, 0))


def init_params(key, c_in=4, c_feat=32, bottleneck=16):
    k = jax.random.split(key, 6)
    backbone_w = 0.2 * jax.random.normal(k[0], (c_in, c_feat), jnp.float32)
    backbone_b = 0.05 * jax.random.normal(k[1], (1, c_feat), jnp.float32)
    cls_w = 0.1 * jax.random.normal(k[2], (PART, c_feat, bottleneck), jnp.float32)
    gamma = 1.0 + 0.1 * jax.random.normal(k[3], (PART, 1, bottleneck), jnp.float32)
    beta = 0.05 * jax.random.normal(k[4], (PART, 1, bottleneck), jnp.float32)
    running_mean = 0.1 * jax.random.normal(k[5], (PART, 1, bottleneck), jnp.float32)
    running_var = jnp.ones((PART, 1, bottleneck), jnp.float32)
    eps = 1e-5
    scale = gamma * jax.lax.rsqrt(running_var + eps)
    shift = beta - running_mean * scale
    return dict(backbone_w=backbone_w, backbone_b=backbone_b,
                cls_w=cls_w, cls_scale=scale, cls_shift=shift)


def reference(x_nchw, params, featrue_H):
    # Pure-JAX f32 reference of the same forward pass.
    x = jnp.transpose(x_nchw, (0, 2, 3, 1)).astype(jnp.float32)
    y = jnp.einsum("nhwc,cf->nhwf", x, params["backbone_w"]) + params["backbone_b"][0]
    y = jnp.maximum(y, 0.0)
    n, h, w, cf = y.shape
    pooled = y.reshape(n, PART, h // PART, w, cf).mean(axis=(2, 3))   # (N, 6, Cf)
    if not featrue_H:
        return jnp.transpose(pooled, (0, 2, 1))
    z = jnp.einsum("npc,pcb->npb", pooled, params["cls_w"])
    z = z * params["cls_scale"][None, :, 0, :] + params["cls_shift"][None, :, 0, :]
    return jnp.transpose(z, (0, 2, 1))


if __name__ == "__main__":
    key = jax.random.PRNGKey(0)
    k_x, k_p = jax.random.split(key)
    # Small shapes: N=2, C_in=4, H=12 (6 parts x 2 rows), W=8.
    x = jax.random.normal(k_x, (2, 4, 12, 8), jnp.float32)
    params = init_params(k_p, c_in=4, c_feat=32, bottleneck=16)

    # featrue_H = True path (per-part classifiers[i].add_block)
    f_h = jax.block_until_ready(pcb_test_forward(x, params, featrue_H=True))
    ref_h = reference(x, params, featrue_H=True)
    assert f_h.shape == (2, 16, 6), f_h.shape
    assert jnp.allclose(f_h, ref_h, rtol=2e-2, atol=2e-3), (
        float(jnp.max(jnp.abs(f_h - ref_h))))

    # featrue_H = False path (raw pooled backbone feature)
    f_p = jax.block_until_ready(pcb_test_forward(x, params, featrue_H=False))
    ref_p = reference(x, params, featrue_H=False)
    assert f_p.shape == (2, 32, 6), f_p.shape
    assert jnp.allclose(f_p, ref_p, rtol=2e-2, atol=2e-3), (
        float(jnp.max(jnp.abs(f_p - ref_p))))

    print("KERNEL_OK")
</pallas_src>

<mosaic_0001>
module attributes {stable_mosaic.version = 11 : i64} {
  func.func @_pcb_cls_kernel(%arg0: i32, %arg1: i32, %arg2: memref<8x1x16x4xbf16, #tpu.memory_space<vmem>>, %arg3: memref<4x128xbf16, #tpu.memory_space<vmem>>, %arg4: memref<1x128xf32, #tpu.memory_space<vmem>>, %arg5: memref<1x128x128xbf16, #tpu.memory_space<vmem>>, %arg6: memref<1x1x128xf32, #tpu.memory_space<vmem>>, %arg7: memref<1x1x128xf32, #tpu.memory_space<vmem>>, %arg8: memref<8x128xf32, #tpu.memory_space<vmem>>) attributes {dimension_semantics = [#tpu.dimension_semantics<parallel>, #tpu.dimension_semantics<parallel>], iteration_bounds = array<i64: 6, 1>, scalar_prefetch = 0 : i64, scratch_operands = 0 : i64, tpu.core_type = #tpu.core_type<tc>, window_params = [{transform_indices = @transform_0, window_bounds = array<i64: 8, 1, 16, 4>}, {pipeline_mode = #tpu.pipeline_mode<synchronous>, transform_indices = @transform_1, window_bounds = array<i64: 4, 128>}, {pipeline_mode = #tpu.pipeline_mode<synchronous>, transform_indices = @transform_2, window_bounds = array<i64: 1, 128>}, {transform_indices = @transform_3, window_bounds = array<i64: 1, 128, 128>}, {transform_indices = @transform_4, window_bounds = array<i64: 1, 1, 128>}, {transform_indices = @transform_5, window_bounds = array<i64: 1, 1, 128>}, {transform_indices = @transform_6, window_bounds = array<i64: 8, 128>}]} {
    %c0 = arith.constant 0 : index
    %c0_0 = arith.constant 0 : index
    %c0_1 = arith.constant 0 : index
    %c0_2 = arith.constant 0 : index
    %0 = vector.load %arg2[%c0, %c0_0, %c0_1, %c0_2] : memref<8x1x16x4xbf16, #tpu.memory_space<vmem>>, vector<8x1x16x4xbf16>
    %1 = vector.shape_cast %0 : vector<8x1x16x4xbf16> to vector<8x16x4xbf16>
    %2 = vector.shape_cast %1 : vector<8x16x4xbf16> to vector<128x4xbf16>
    %c0_3 = arith.constant 0 : index
    %c0_4 = arith.constant 0 : index
    %3 = vector.load %arg3[%c0_3, %c0_4] : memref<4x128xbf16, #tpu.memory_space<vmem>>, vector<4x128xbf16>
    %cst = arith.constant dense<0.000000e+00> : vector<128x128xf32>
    %4 = tpu.matmul %2, %3, %cst {dimension_numbers = #tpu.dot_dimension_numbers<[1], [0], [0], [1], [0, 0, 1, 1], [], []>} : vector<128x4xbf16>, vector<4x128xbf16>, vector<128x128xf32> -> vector<128x128xf32>
    %c0_5 = arith.constant 0 : index
    %c0_6 = arith.constant 0 : index
    %5 = vector.load %arg4[%c0_5, %c0_6] : memref<1x128xf32, #tpu.memory_space<vmem>>, vector<1x128xf32>
    %6 = vector.broadcast %5 : vector<1x128xf32> to vector<128x128xf32>
    %7 = arith.addf %4, %6 : vector<128x128xf32>
    %cst_7 = arith.constant 0.000000e+00 : f32
    %8 = vector.broadcast %cst_7 : f32 to vector<128x128xf32>
    %9 = arith.maximumf %7, %8 : vector<128x128xf32>
    %10 = vector.shape_cast %9 : vector<128x128xf32> to vector<8x16x128xf32>
    %cst_8 = arith.constant dense<0.000000e+00> : vector<8x128xf32>
    %11 = vector.multi_reduction <add>, %10, %cst_8 [1] : vector<8x16x128xf32> to vector<8x128xf32>
    %cst_9 = arith.constant 6.250000e-02 : f32
    %12 = vector.broadcast %cst_9 : f32 to vector<8x128xf32>
    %13 = arith.mulf %11, %12 : vector<8x128xf32>
    %14 = arith.truncf %13 : vector<8x128xf32> to vector<8x128xbf16>
    %c0_10 = arith.constant 0 : index
    %c0_11 = arith.constant 0 : index
    %c0_12 = arith.constant 0 : index
    %15 = vector.load %arg5[%c0_10, %c0_11, %c0_12] : memref<1x128x128xbf16, #tpu.memory_space<vmem>>, vector<1x128x128xbf16>
    %16 = vector.shape_cast %15 : vector<1x128x128xbf16> to vector<128x128xbf16>
    %cst_13 = arith.constant dense<0.000000e+00> : vector<8x128xf32>
    %17 = tpu.matmul %14, %16, %cst_13 {dimension_numbers = #tpu.dot_dimension_numbers<[1], [0], [0], [1], [0, 0, 1, 1], [], []>} : vector<8x128xbf16>, vector<128x128xbf16>, vector<8x128xf32> -> vector<8x128xf32>
    %c0_14 = arith.constant 0 : index
    %c0_15 = arith.constant 0 : index
    %c0_16 = arith.constant 0 : index
    %18 = vector.load %arg6[%c0_14, %c0_15, %c0_16] : memref<1x1x128xf32, #tpu.memory_space<vmem>>, vector<1x1x128xf32>
    %19 = vector.shape_cast %18 : vector<1x1x128xf32> to vector<1x128xf32>
    %20 = vector.broadcast %19 : vector<1x128xf32> to vector<8x128xf32>
    %21 = arith.mulf %17, %20 : vector<8x128xf32>
    %c0_17 = arith.constant 0 : index
    %c0_18 = arith.constant 0 : index
    %c0_19 = arith.constant 0 : index
    %22 = vector.load %arg7[%c0_17, %c0_18, %c0_19] : memref<1x1x128xf32, #tpu.memory_space<vmem>>, vector<1x1x128xf32>
    %23 = vector.shape_cast %22 : vector<1x1x128xf32> to vector<1x128xf32>
    %24 = vector.broadcast %23 : vector<1x128xf32> to vector<8x128xf32>
    %25 = arith.addf %21, %24 : vector<8x128xf32>
    %c0_20 = arith.constant 0 : index
    %c0_21 = arith.constant 0 : index
    %26 = vector.load %arg8[%c0_20, %c0_21] : memref<8x128xf32, #tpu.memory_space<vmem>>, vector<8x128xf32>
    tpu.vector_store %arg8[%c0_20, %c0_21], %25 {strides = array<i32>} : memref<8x128xf32, #tpu.memory_space<vmem>>, vector<8x128xf32>,
    return
  }
  func.func @transform_0(%arg0: i32, %arg1: i32) -> (i32, i32, i32, i32) {
    %c0_i32 = arith.constant 0 : i32
    %c0_i32_0 = arith.constant 0 : i32
    %c0_i32_1 = arith.constant 0 : i32
    return %arg1, %arg0, %c0_i32, %c0_i32_0 : i32, i32, i32, i32
  }
  func.func @transform_1(%arg0: i32, %arg1: i32) -> (i32, i32) {
    %c0_i32 = arith.constant 0 : i32
    %c0_i32_0 = arith.constant 0 : i32
    %c0_i32_1 = arith.constant 0 : i32
    return %c0_i32, %c0_i32_0 : i32, i32
  }
  func.func @transform_2(%arg0: i32, %arg1: i32) -> (i32, i32) {
    %c0_i32 = arith.constant 0 : i32
    %c0_i32_0 = arith.constant 0 : i32
    %c0_i32_1 = arith.constant 0 : i32
    return %c0_i32, %c0_i32_0 : i32, i32
  }
  func.func @transform_3(%arg0: i32, %arg1: i32) -> (i32, i32, i32) {
    %c0_i32 = arith.constant 0 : i32
    %c0_i32_0 = arith.constant 0 : i32
    %c0_i32_1 = arith.constant 0 : i32
    return %arg0, %c0_i32, %c0_i32_0 : i32, i32, i32
  }
  func.func @transform_4(%arg0: i32, %arg1: i32) -> (i32, i32, i32) {
    %c0_i32 = arith.constant 0 : i32
    %c0_i32_0 = arith.constant 0 : i32
    %c0_i32_1 = arith.constant 0 : i32
    return %arg0, %c0_i32, %c0_i32_0 : i32, i32, i32
  }
  func.func @transform_5(%arg0: i32, %arg1: i32) -> (i32, i32, i32) {
    %c0_i32 = arith.constant 0 : i32
    %c0_i32_0 = arith.constant 0 : i32
    %c0_i32_1 = arith.constant 0 : i32
    return %arg0, %c0_i32, %c0_i32_0 : i32, i32, i32
  }
  func.func @transform_6(%arg0: i32, %arg1: i32) -> (i32, i32) {
    %c1_i32 = arith.constant 1 : i32
    %0 = arith.muli %arg0, %c1_i32 : i32
    %1 = arith.addi %0, %arg1 : i32
    %c0_i32 = arith.constant 0 : i32
    %c0_i32_0 = arith.constant 0 : i32
    return %1, %c0_i32 : i32, i32
  }
}

</mosaic_0001>

<bundles_post_ra>
// kernel: tpu_custom_call.1
= control target key start
LH: loop header
LB: loop body
LE: loop exit
PB: predicated region body
PF: predicated region fallthrough
CT: control target
= control target key end

     0   :  { %11 = vsyncpa [#allocation4], 0  ;;  %s1436_s0 = inlined_call_operand.vmem [shape: bf16[8,6,16,4], index: 0, kind: input, shape index: {}]   ;;  %s1437_s1 = inlined_call_operand.vmem [shape: bf16[4,128], index: 1, kind: input, shape index: {}]   ;;  %s1438_s2 = inlined_call_operand.vmem [shape: f32[1,128], index: 2, kind: input, shape index: {}]   ;;  %s1439_s3 = inlined_call_operand.vmem [shape: bf16[6,128,128], index: 3, kind: input, shape index: {}]   ;;  %s1440_s4 = inlined_call_operand.vmem [shape: f32[6,1,128], index: 4, kind: input, shape index: {}]   ;;  %s1441_s5 = inlined_call_operand.vmem [shape: f32[6,1,128], index: 5, kind: input, shape index: {}]   ;;  %s1442_s6 = inlined_call_operand.hbm [shape: f32[48,128], index: 6, kind: output, shape index: {}]  }
   0x1   :  { %13 = vsyncpa [#allocation4 + $0x1], 0  ;;  %s1268_s21 = smov 0   ;;  %s1270_s22 = smov 0  }
   0x2   :  { %s1272_s23 = smov 0   ;;  %s1274_s24 = smov 0  }
   0x3   :  { %s1276_s25 = smov 0   ;;  %s1278_s26 = smov 0  }
   0x4 LB: > { %s975_s27 = sadd.s32 4294967295, %s1228_s26   ;;  %s976_s28 = sadd.s32 4294967294, %s1228_s26   ;;  %s1228_s26 = sphi %s1278_s26, %s19_s26   ;;  %s1224_s25 = sphi %s1276_s25, %s1449_s25   ;;  %s1220_s24 = sphi %s1274_s24, %s1448_s24   ;;  %s1216_s23 = sphi %s1272_s23, %s1447_s23   ;;  %s1212_s22 = sphi %s1270_s22, %s1446_s22   ;;  %s1208_s21 = sphi %s1268_s21, %s1445_s21  }
   0x5   : > { %s31_s29 = sadd.s32 1, %s1224_s25  ;;  %s40_s30 = sadd.s32 1, %s1216_s23 }
   0x6   : > { %p33_p0 = scmp.ge.s32.totalorder %s31_s29, 6  ;;  %p47_p1 = scmp.ne.s32.totalorder %s1216_s23, %s1212_s22 }
   0x7   : > { %p48_p2 = scmp.eq.s32.totalorder %s1228_s26, 0  ;;  %p199_p3 = scmp.eq.s32.totalorder %s975_s27, 5 }
   0x8   : > { %s1451_s29 = smov (%p33_p0, %s31_s29), 0  ;;  %p204_p6 = scmp.ne.s32.totalorder %s1212_s22, %s1208_s21 }
   0x9   : > { %p49_p4 = por %p48_p2, %p47_p1  ;;  %p1307_p5 = por %p199_p3, %p47_p1 }
   0xa   : > { %s36_s8 = ssub.s32 %s1224_s25, %s1451_s29  ;;  %p205_p8 = scmp.eq.s32.totalorder %s976_s28, 5 }
   0xb   : > { %p38_p7 = scmp.eq.s32.totalorder %s36_s8, 0  ;;  %p978_p10 = scmp.ge.s32.totalorder %s1228_s26, 6 }
   0xc   : > { %p1318_p9 = por %p205_p8, %p204_p6 }
   0xd   : > { %s1316_s9 = scalar_select %p38_p7, %s1216_s23, %s40_s30  }
   0xe   : > { %227 = sbr.rel (%p978_p10) target bundleno = 29 (0x1d), region = 24 }
  0x15   : > { %230 = sbr.rel (!%p49_p4) target bundleno = 29 (0x1d), region = 28  ;;  %s232_s11 = sand.u32 (%p49_p4), 1, %s1216_s23  }
  0x16   : > { %s1018_s12 = sshll.u32 (%p49_p4), %s1224_s25, 3  ;;  %s979_s13 = sshll.u32 (%p49_p4), %s232_s11, 6 }
  0x17   : > { %s240_s16 = scalar_lea.vmem (%p49_p4), %s1436_s0, %s1018_s12  ;;  %s234_s17 = scalar_lea.vmem (%p49_p4), [#allocation2], %s979_s13 }
  0x18   : > { %v256_v0 = vld [vmem:[%s240_s16] sm:$0xff] (%p49_p4)   ;;  %v260_v1 = vld [vmem:[%s240_s16 + $0x30] sm:$0xff] (%p49_p4)  }
  0x19   : > { %v264_v2 = vld [vmem:[%s240_s16 + $0x60] sm:$0xff] (%p49_p4)   ;;  %257 = vst [vmem:[%s234_s17] sm:$0xff] (%p49_p4), %v256_v0   ;;  %261 = vst [vmem:[%s234_s17 + $0x8] sm:$0xff] (%p49_p4), %v260_v1   ;;  %v268_v3 = vld [vmem:[%s240_s16 + $0x90] sm:$0xff] (%p49_p4)  }
  0x1a   : > { %265 = vst [vmem:[%s234_s17 + $0x10] sm:$0xff] (%p49_p4), %v264_v2   ;;  %v272_v4 = vld [vmem:[%s240_s16 + $0xc0] sm:$0xff] (%p49_p4)   ;;  %v276_v5 = vld [vmem:[%s240_s16 + $0xf0] sm:$0xff] (%p49_p4)   ;;  %269 = vst [vmem:[%s234_s17 + $0x18] sm:$0xff] (%p49_p4), %v268_v3  }
  0x1b   : > { %273 = vst [vmem:[%s234_s17 + $0x20] sm:$0xff] (%p49_p4), %v272_v4   ;;  %277 = vst [vmem:[%s234_s17 + $0x28] sm:$0xff] (%p49_p4), %v276_v5   ;;  %v280_v6 = vld [vmem:[%s240_s16 + $0x120] sm:$0xff] (%p49_p4)   ;;  %v284_v7 = vld [vmem:[%s240_s16 + $0x150] sm:$0xff] (%p49_p4)  }
  0x1c   : > { %281 = vst [vmem:[%s234_s17 + $0x30] sm:$0xff] %v280_v6   ;;  %285 = vst [vmem:[%s234_s17 + $0x38] sm:$0xff] %v284_v7  }
  0x1d PF: > { %p982_p11 = scmp.ge.s32.totalorder %s1228_s26, 1  ;;  %p361_p12 = scmp.lt.s32.totalorder %s1228_s26, 7 }
  0x1f   : > { %p362_p13 = pnand %p982_p11, %p361_p12 }
  0x20   : > { %v438_v8 = vld [vmem:[%s1437_s1] sm:$0x3] (!%p362_p13)  ;;  %vm511_vm0 = vcmask (!%p362_p13), 1041408   ;;  %s1334_s20 = sand.u32 (!%p362_p13), 1, %s1212_s22   ;;  %vm486_vm1 = vcmask (!%p362_p13), 31744   ;;  %p409_p0 = scmp.lt.s32.totalorder (!%p362_p13), %s1220_s24, 5 }
  0x21   : > { %365 = sbr.rel (%p362_p13) target bundleno = 534 (0x216), region = 81  ;;  %1076 = vmatprep.subr.msk.bf16.mxu0 (!%p362_p13), %vm511_vm0, %v438_v8  ;;  %v513_v9 = vsel (!%p362_p13), %vm511_vm0, %v438_v8, 0  ;;  %s983_s27 = sshll.u32 (!%p362_p13), %s1334_s20, 6  ;;  %v1230_v19 = vmov (!%p362_p13), 0.0   ;;  %vm1231_vm2 = vmmov (!%p362_p13), 0   ;;  %vm732_vm3 = vcmask (!%p362_p13), 1041409  }
  0x22   : > { %1039 = vmatpush3.bf16.msra.mxu0 (!%p362_p13), %v513_v9  ;;  %s370_s28 = scalar_lea.vmem (!%p362_p13), [#allocation2], %s983_s27  ;;  %1056 = vmatprep.subr.bf16.mxu1 (!%p362_p13), %v1230_v19  ;;  %v1356_v27 = vld [vmem:[%s1438_s2] ss:$0 sm:$0xff] (!%p362_p13)  ;;  %vm734_vm4 = vcmask (!%p362_p13), 1042434   ;;  %vm736_vm5 = vcmask (!%p362_p13), 1043459   ;;  %vm738_vm6 = vcmask (!%p362_p13), 1044484  }
  0x23   : > { %v1134_v10 = vld [vmem:[%s370_s28] sm:$0xff] (!%p362_p13)   ;;  %v1135_v11 = vld [vmem:[%s370_s28 + $0x8] sm:$0xff] (!%p362_p13)   ;;  %v1136_v12 = vld [vmem:[%s370_s28 + $0x10] sm:$0xff] (!%p362_p13)   ;;  %1072 = vmatprep.mubr.msk.bf16.mxu1 (!%p362_p13), %vm1231_vm2, %v1230_v19  ;;  %vm740_vm7 = vcmask (!%p362_p13), 1045509   ;;  %vm742_vm8 = vcmask (!%p362_p13), 1046534   ;;  %vm744_vm9 = vcmask (!%p362_p13), 1047559  }
  0x24   : > { %1040 = vmatprep.mubr.msk.bf16.mxu0 (!%p362_p13), %vm486_vm1, %v1134_v10  ;;  %v1137_v13 = vld [vmem:[%s370_s28 + $0x18] sm:$0xff] (!%p362_p13)   ;;  %v1138_v14 = vld [vmem:[%s370_s28 + $0x20] sm:$0xff] (!%p362_p13)   ;;  %v1139_v15 = vld [vmem:[%s370_s28 + $0x28] sm:$0xff] (!%p362_p13)   ;;  %s984_s16 = sshll.u32 (!%p362_p13), %s1334_s20, 3  ;;  %s1015_s11 = sshll.u32 (!%p362_p13), %s1220_s24, 7 }
  0x25   : > { %1041 = vmatmul.mubr.msk.bf16.vlgmr.msra.gmra.mrb[0].mxu0 (!%p362_p13), %vm486_vm1, %v1135_v11  ;;  %v1140_v16 = vld [vmem:[%s370_s28 + $0x30] sm:$0xff] (!%p362_p13)   ;;  %v1141_v17 = vld [vmem:[%s370_s28 + $0x38] sm:$0xff] (!%p362_p13)   ;;  %s407_s12 = scalar_lea.vmem (!%p362_p13), [#allocation3], %s984_s16  ;;  %s1388_s17 = scalar_lea.hbm (!%p362_p13), %s1442_s6, %s1015_s11 }
  0x26   : > { %1044 = vmatprep.mubr.msk.bf16.mxu0 (!%p362_p13), %vm486_vm1, %v1136_v12  ;;  %s1232_s16 = smov (!%p362_p13), [#allocation3]  }
  0x27   : > { %s1154_s18 = sshll.u32 (!%p362_p13), %s1232_s16, 4  ;;  %s1155_s18 = int_to_ptr.vmem [resolvable:$false] %s1154_s18 }
  0x28   : > { %s1347_s30 = scalar_select %p409_p0, %s1220_s24, 5 }
  0x2a   : > { %s1019_s8 = sshll.u32 %s1347_s30, 6  ;;  %s416_s19 = scalar_lea.vmem %s1440_s4, %s1347_s30 }
  0x2b   : > { %s413_s13 = scalar_lea.vmem %s1439_s3, %s1019_s8  ;;  %s419_s8 = scalar_lea.vmem %s1441_s5, %s1347_s30 }
  0x2c   : > { %v1142_v18 = vld [vmem:[%s413_s13] sm:$0xff]   ;;  %v1143_v20 = vld [vmem:[%s413_s13 + $0x8] sm:$0xff]   ;;  %v1144_v21 = vld [vmem:[%s413_s13 + $0x10] sm:$0xff]   ;;  %s854_s30 = scalar_lea.sflag [#allocation4], %s1334_s20 }
  0x2d   : > { %1045 = vmatmul.mubr.msk.bf16.gmra.mrb[4].mxu0 %vm486_vm1, %v1137_v13  ;;  %1057 = vmatpush3.bf16.msra.mxu1 %v1142_v18  ;;  %v1145_v22 = vld [vmem:[%s413_s13 + $0x18] sm:$0xff]   ;;  %v1146_v23 = vld [vmem:[%s413_s13 + $0x20] sm:$0xff]   ;;  %v1147_v24 = vld [vmem:[%s413_s13 + $0x28] sm:$0xff]  }
  0x2e   : > { %1048 = vmatprep.mubr.msk.bf16.mxu0 %vm486_vm1, %v1138_v14  ;;  %1058 = vmatprep.subr.bf16.mxu1 %v1230_v19  ;;  %v1148_v25 = vld [vmem:[%s413_s13 + $0x30] sm:$0xff]   ;;  %v1149_v26 = vld [vmem:[%s413_s13 + $0x38] sm:$0xff]   ;;  %s868_s13 = sshll.u32 %s407_s12, 4  ;;  %s1390_s13 = int_to_ptr.vmem [resolvable:$true] %s868_s13 }
  0x2f   : > { %s1150_s24 = scalar_lea.vmem %s1390_s13, 128  ;;  %p1157_p4 = scmp.lt.s32.totalorder %s1390_s13, %s1155_s18 }
  0x30   : > { %p1151_p1 = scmp.ne.s32.totalorder %s1390_s13, %s1150_s24 }
  0x31   : > { %1059 = vmatpush3.bf16.msra.mxu1 %v1143_v20 }
  0x32   : > { %1060 = vmatprep.subr.bf16.mxu1 %v1230_v19  ;;  %p1152_p2 = pnand %p1151_p1, %p1307_p5 }
  0x34   : > { %p1153_p3 = pneg %p1152_p2 }
  0x35   : > { %1049 = vmatmul.mubr.msk.bf16.gmra.mrb[8].mxu0 %vm486_vm1, %v1139_v15  ;;  %1061 = vmatpush3.bf16.msra.mxu1 %v1144_v21 }
  0x36   : > { %1052 = vmatprep.mubr.msk.bf16.mxu0 %vm486_vm1, %v1140_v16  ;;  %1062 = vmatprep.subr.bf16.mxu1 %v1230_v19 }
  0x39   : > { %1063 = vmatpush3.bf16.msra.mxu1 %v1145_v22 }
  0x3a   : > { %1064 = vmatprep.subr.bf16.mxu1 %v1230_v19 }
  0x3d   : > { %1053 = vmatmul.mubr.msk.bf16.gmra.mrb[12].mxu0 %vm486_vm1, %v1141_v17  ;;  %1065 = vmatpush3.bf16.msra.mxu1 %v1146_v23 }
  0x3e   : > { %1066 = vmatprep.subr.bf16.mxu1 %v1230_v19 }
  0x41   : > { %1067 = vmatpush3.bf16.msra.mxu1 %v1147_v24 }
  0x42   : > { %1068 = vmatprep.subr.bf16.mxu1 %v1230_v19 }
  0x45   : > { %1069 = vmatpush3.bf16.msra.mxu1 %v1148_v25 }
  0x46   : > { %1070 = vmatprep.subr.bf16.mxu1 %v1230_v19 }
  0x49   : > { %1071 = vmatpush3.bf16.msra.mxu1 %v1149_v26 }
  0xf8   : > { %v1042_v28 = vpop.f32.mrb[0].mxu0 }
  0xf9   : > { %v558_v29 = vadd.f32 %v1042_v28, %v1356_v27  ;;  %v549_v30 = vpop.f32.mrb[1].mxu0 }
  0xfa   : > { %v550_v31 = vadd.f32 %v1356_v27, %v549_v30  ;;  %v1043_v32 = vpop.f32.mrb[2].mxu0 }
  0xfb   : > { %v561_v33 = vadd.f32 %v1043_v32, %v1356_v27  ;;  %v552_v34 = vpop.f32.mrb[3].mxu0  ;;  %v614_v36 = vmax.f32 %v558_v29, 0.0 }
  0xfc   : > { %v553_v35 = vadd.f32 %v1356_v27, %v552_v34  ;;  %v612_v38 = vmax.f32 %v550_v31, 0.0 }
  0xfd   : > { %v615_v37 = vmax.f32 %v561_v33, 0.0 }
  0xfe   : > { %v613_v39 = vmax.f32 %v553_v35, 0.0 }
  0xff   : > { %v635_v40 = vadd.f32 %v615_v37, %v614_v36 }
 0x100   : > { %v628_v41 = vadd.f32 %v613_v39, %v612_v38  ;;  %v1046_v42 = vpop.f32.mrb[4].mxu0 }
 0x101   : > { %v636_v43 = vrot.slane %v635_v40, 4  ;;  %v574_v44 = vadd.f32 %v1046_v42, %v1356_v27  ;;  %v565_v45 = vpop.f32.mrb[5].mxu0 }
 0x102   : > { %v629_v46 = vrot.slane %v628_v41, 4  ;;  %v566_v47 = vadd.f32 %v1356_v27, %v565_v45  ;;  %v1047_v48 = vpop.f32.mrb[6].mxu0 }
 0x103   : > { %v637_v49 = vadd.f32 %v636_v43, %v635_v40  ;;  %v577_v50 = vadd.f32 %v1047_v48, %v1356_v27  ;;  %v568_v51 = vpop.f32.mrb[7].mxu0  ;;  %v618_v55 = vmax.f32 %v574_v44, 0.0 }
 0x104   : > { %v630_v52 = vadd.f32 %v629_v46, %v628_v41  ;;  %v569_v53 = vadd.f32 %v1356_v27, %v568_v51  ;;  %v616_v58 = vmax.f32 %v566_v47, 0.0 }
 0x105   : > { %v638_v54 = vrot.slane %v637_v49, 2  ;;  %v619_v56 = vmax.f32 %v577_v50, 0.0 }
 0x106   : > { %v631_v57 = vrot.slane %v630_v52, 2  ;;  %v617_v59 = vmax.f32 %v569_v53, 0.0 }
 0x107   : > { %v639_v60 = vadd.f32 %v638_v54, %v637_v49  ;;  %v649_v61 = vadd.f32 %v619_v56, %v618_v55 }
 0x108   : > { %v632_v62 = vadd.f32 %v631_v57, %v630_v52  ;;  %v642_v63 = vadd.f32 %v617_v59, %v616_v58  ;;  %v1050_v0 = vpop.f32.mrb[8].mxu0 }
 0x109   : > { %v640_v1 = vrot.slane %v639_v60, 1  ;;  %v650_v2 = vrot.slane %v649_v61, 4  ;;  %v590_v3 = vadd.f32 %v1050_v0, %v1356_v27  ;;  %v581_v4 = vpop.f32.mrb[9].mxu0 }
 0x10a   : > { %v633_v5 = vrot.slane %v632_v62, 1  ;;  %v643_v6 = vrot.slane %v642_v63, 4  ;;  %v582_v7 = vadd.f32 %v1356_v27, %v581_v4  ;;  %v1051_v8 = vpop.f32.mrb[10].mxu0 }
 0x10b   : > { %v641_v9 = vadd.f32 %v640_v1, %v639_v60  ;;  %v651_v10 = vadd.f32 %v650_v2, %v649_v61  ;;  %v593_v11 = vadd.f32 %v1051_v8, %v1356_v27  ;;  %v584_v12 = vpop.f32.mrb[11].mxu0  ;;  %v622_v18 = vmax.f32 %v590_v3, 0.0 }
 0x10c   : > { %v634_v13 = vadd.f32 %v633_v5, %v632_v62  ;;  %v644_v14 = vadd.f32 %v643_v6, %v642_v63  ;;  %v585_v15 = vadd.f32 %v1356_v27, %v584_v12  ;;  %v620_v22 = vmax.f32 %v582_v7, 0.0 }
 0x10d   : > { %v685_v16 = vmul.f32 0.0625, %v641_v9  ;;  %v652_v17 = vrot.slane %v651_v10, 2  ;;  %v623_v19 = vmax.f32 %v593_v11, 0.0 }
 0x10e   : > { %v684_v20 = vmul.f32 0.0625, %v634_v13  ;;  %v645_v21 = vrot.slane %v644_v14, 2  ;;  %v621_v23 = vmax.f32 %v585_v15, 0.0 }
 0x10f   : > { %v693_v24 = vpack.c.bf16 %v685_v16, %v685_v16  ;;  %v653_v25 = vadd.f32 %v652_v17, %v651_v10  ;;  %v663_v26 = vadd.f32 %v623_v19, %v622_v18 }
 0x110   : > { %v692_v28 = vpack.c.bf16 %v684_v20, %v684_v20  ;;  %v646_v29 = vadd.f32 %v645_v21, %v644_v14  ;;  %v656_v30 = vadd.f32 %v621_v23, %v620_v22  ;;  %v1054_v31 = vpop.f32.mrb[12].mxu0 }
 0x111   : > { %v725_v32 = vunpack.c.l.b16 %v693_v24  ;;  %v654_v33 = vrot.slane %v653_v25, 1  ;;  %v664_v34 = vrot.slane %v663_v26, 4  ;;  %v606_v35 = vadd.f32 %v1054_v31, %v1356_v27  ;;  %v597_v36 = vpop.f32.mrb[13].mxu0 }
 0x112   : > { %v724_v37 = vunpack.c.l.b16 %v692_v28  ;;  %v647_v38 = vrot.slane %v646_v29, 1  ;;  %v657_v39 = vrot.slane %v656_v30, 4  ;;  %v598_v40 = vadd.f32 %v1356_v27, %v597_v36  ;;  %v1055_v41 = vpop.f32.mrb[14].mxu0 }
 0x113   : > { %v655_v42 = vadd.f32 %v654_v33, %v653_v25  ;;  %v665_v43 = vadd.f32 %v664_v34, %v663_v26  ;;  %v609_v44 = vadd.f32 %v1055_v41, %v1356_v27  ;;  %v600_v45 = vpop.f32.mrb[15].mxu0  ;;  %v626_v49 = vmax.f32 %v606_v35, 0.0 }
 0x114   : > { %v733_v46 = vsel %vm732_vm3, %v725_v32, %v724_v37  ;;  %v648_v47 = vadd.f32 %v647_v38, %v646_v29  ;;  %v658_v48 = vadd.f32 %v657_v39, %v656_v30  ;;  %v601_v53 = vadd.f32 %v1356_v27, %v600_v45  ;;  %v1012_v37 = vld [vmem:[%s416_s19] ss:$0 sm:$0xff]  ;;  %s1156_s19 = scalar_lea.vmem %s1155_s18, 256 }
 0x115   : > { %v687_v50 = vmul.f32 0.0625, %v655_v42  ;;  %v666_v51 = vrot.slane %v665_v43, 2  ;;  %v627_v52 = vmax.f32 %v609_v44, 0.0  ;;  %v624_v56 = vmax.f32 %v598_v40, 0.0  ;;  %v1013_v39 = vld [vmem:[%s419_s8] ss:$0 sm:$0xff]  ;;  %p1158_p6 = scmp.lt.s32.totalorder %s1156_s19, %s1150_s24 }
 0x116   : > { %v686_v54 = vmul.f32 0.0625, %v648_v47  ;;  %v659_v55 = vrot.slane %v658_v48, 2  ;;  %v625_v60 = vmax.f32 %v601_v53, 0.0 }
 0x117   : > { %v695_v57 = vpack.c.bf16 %v687_v50, %v687_v50  ;;  %v667_v58 = vadd.f32 %v666_v51, %v665_v43  ;;  %v677_v59 = vadd.f32 %v627_v52, %v626_v49  ;;  %p1159_p7 = por %p1158_p6, %p1157_p4 }
 0x118   : > { %v694_v61 = vpack.c.bf16 %v686_v54, %v686_v54  ;;  %v660_v62 = vadd.f32 %v659_v55, %v658_v48  ;;  %v670_v1 = vadd.f32 %v625_v60, %v624_v56 }
 0x119   : > { %v668_v63 = vrot.slane %v667_v58, 1  ;;  %v678_v0 = vrot.slane %v677_v59, 4  ;;  %v727_v4 = vunpack.c.l.b16 %v695_v57  ;;  %p1160_p8 = pnand %p1159_p7, %p1153_p3 }
 0x11a   : > { %v726_v2 = vunpack.c.l.b16 %v694_v61  ;;  %v661_v3 = vrot.slane %v660_v62, 1  ;;  %v671_v27 = vrot.slane %v670_v1, 4 }
 0x11b   : > { %v669_v5 = vadd.f32 %v668_v63, %v667_v58  ;;  %v679_v6 = vadd.f32 %v678_v0, %v677_v59 }
 0x11c   : > { %v735_v7 = vsel %vm734_vm4, %v726_v2, %v733_v46  ;;  %v662_v8 = vadd.f32 %v661_v3, %v660_v62  ;;  %v672_v11 = vadd.f32 %v671_v27, %v670_v1 }
 0x11d   : > { %v689_v9 = vmul.f32 0.0625, %v669_v5  ;;  %v680_v10 = vrot.slane %v679_v6, 2  ;;  %v737_v12 = vsel %vm736_vm5, %v727_v4, %v735_v7 }
 0x11e   : > { %v688_v13 = vmul.f32 0.0625, %v662_v8  ;;  %v673_v16 = vrot.slane %v672_v11, 2 }
 0x11f   : > { %v697_v14 = vpack.c.bf16 %v689_v9, %v689_v9  ;;  %v681_v15 = vadd.f32 %v680_v10, %v679_v6 }
 0x120   : > { %v696_v17 = vpack.c.bf16 %v688_v13, %v688_v13  ;;  %v674_v19 = vadd.f32 %v673_v16, %v672_v11 }
 0x121   : > { %v682_v18 = vrot.slane %v681_v15, 1  ;;  %v729_v21 = vunpack.c.l.b16 %v697_v14 }
 0x122   : > { %v728_v20 = vunpack.c.l.b16 %v696_v17  ;;  %v675_v23 = vrot.slane %v674_v19, 1 }
 0x123   : > { %v683_v22 = vadd.f32 %v682_v18, %v681_v15 }
 0x124   : > { %v739_v24 = vsel %vm738_vm6, %v728_v20, %v737_v12  ;;  %v676_v26 = vadd.f32 %v675_v23, %v674_v19 }
 0x125   : > { %v691_v25 = vmul.f32 0.0625, %v683_v22  ;;  %v741_v28 = vsel %vm740_vm7, %v729_v21, %v739_v24 }
 0x126   : > { %v690_v29 = vmul.f32 0.0625, %v676_v26 }
 0x127   : > { %v699_v30 = vpack.c.bf16 %v691_v25, %v691_v25 }
 0x128   : > { %v698_v31 = vpack.c.bf16 %v690_v29, %v690_v29 }
 0x129   : > { %v731_v33 = vunpack.c.l.b16 %v699_v30 }
 0x12a   : > { %v730_v32 = vunpack.c.l.b16 %v698_v31 }
 0x12c   : > { %v743_v34 = vsel %vm742_vm8, %v730_v32, %v741_v28 }
 0x12d   : > { %v745_v35 = vsel %vm744_vm9, %v731_v33, %v743_v34 }
 0x12e   : > { %v746_v36 = vpack.c.b16 %v745_v35, %v745_v35 }
 0x130   : > { %1073 = vmatmul.mubr.bf16.vlgmr.msra.gmra.mrb[0].mxu1 %v746_v36 }
 0x203   : > { %v830_v38 = vpop.f32.mrb[0].mxu1 }
 0x204   : > { %v843_v40 = vmul.f32 %v1012_v37, %v830_v38  ;;  %v1074_v41 = vpop.f32.mrb[1].mxu1 }
 0x205   : > { %v833_v42 = vpop.f32.mrb[2].mxu1 }
 0x206   : > { %v851_v43 = vadd.f32 %v1013_v39, %v843_v40  ;;  %v1075_v44 = vpop.f32.mrb[3].mxu1 }
 0x208   : > { %852 = vst [vmem:[%s407_s12] sm:$0xff] %v851_v43 }
 0x209   : > { %1163 = shalt.err (!%p1160_p8)
}
 0x20a   : > { %s1164_s20 = scalar_lea.hbm %s1388_s17, 128  ;;  %s1168_s8 = scalar_lea.hbm %s1442_s6, 768 }
 0x20b   : > { %p1165_p10 = scmp.ne.s32.totalorder %s1388_s17, %s1164_s20  ;;  %p1169_p13 = scmp.lt.u32.totalorder %s1388_s17, %s1442_s6 }
 0x20c   : > { %p1170_p0 = scmp.lt.u32.totalorder %s1168_s8, %s1164_s20  ;;  %p1172_p2 = scmp.lt.u32.totalorder %s1164_s20, %s1388_s17 }
 0x20d   : > { %p1166_p11 = pnand %p1165_p10, %p1307_p5 }
 0x20e   : > { %p1171_p1 = por %p1170_p0, %p1169_p13 }
 0x20f   : > { %p1167_p12 = pneg %p1166_p11 }
 0x210   : > { %p1173_p3 = por %p1172_p2, %p1171_p1 }
 0x212   : > { %p1174_p4 = pnand %p1173_p3, %p1167_p12 }
 0x214   : > { %1177 = shalt.err (!%p1174_p4)
}
 0x215   : > { %1077 = dma.vmem_to_hbm [thread:$0]  (%p1307_p5), %s1390_s13, 128, %s1388_s17, %s854_s30  }
 0x216 PF: > { %p1083_p6 = scmp.ge.s32.totalorder %s1228_s26, 2  ;;  %s880_s14 = sand.u32 1, %s1208_s21  }
 0x217   : > { %s881_s15 = scalar_lea.sflag [#allocation4], %s880_s14 }
 0x218   : > { %p1080_p7 = pnand %p1083_p6, %p1318_p9 }
 0x21a   : > { %1203 = dma.done.wait (!%p1080_p7), %s881_s15, 128  }
 0x21b   : > { %1205 = vsyncadd (!%p1080_p7), %s881_s15, 4294967168  ;;  %s19_s26 = sadd.s32 1, %s1228_s26   ;;  %s1445_s21 = smov %s1212_s22 }
 0x21c   : > { %p16_p8 = scmp.ge.s32.totalorder %s19_s26, 8   ;;  %s1446_s22 = smov %s1216_s23 }
 0x21d   : > { %s1447_s23 = smov %s1316_s9  ;;  %s1448_s24 = smov %s1224_s25 }
 0x21e   : > { %s1449_s25 = smov %s1451_s29  ;;  %18 = sbr.rel (!%p16_p8) target bundleno = 4 (0x4), region = 134 }
 0x225   :  { %886 = vsyncpa [#allocation4], 1 }
 0x226   :  { %888 = vsyncpa [#allocation4 + $0x1], 1 }

</bundles_post_ra>
